<compile_context>
chip_gen: v7x
topology: tpu7x:2x2x1
jax: 0.10.0
libtpu: 0.0.40
codegen_flags: <defaults>
</compile_context>

<pallas_src>
import jax
import jax.numpy as jnp
from jax.experimental import pallas as pl
from jax.experimental.pallas import tpu as pltpu


def _cdiv(a, b):
    return -(-a // b)


def _vmem_capacity_bytes():
    # Trace-time hardware query; conservative fallback = 64 MiB (v7x per-TC).
    try:
        info = pltpu.get_tpu_info()
        cap = getattr(info, "vmem_capacity_bytes", None)
        if cap:
            return int(cap)
    except Exception:
        pass
    return 64 * 1024 * 1024


def _make_xpos_kernel(num_layers, pool_first):
    def kernel(*refs):
        # refs = (wmix_ref, h_ref_0 .. h_ref_{L-1}, pool_ref, wlin_ref, blin_ref, out_ref)
        wmix_ref = refs[0]                        # (L,) f32, SMEM
        hidden_refs = refs[1:1 + num_layers]      # each (BB, W, D), native dtype, VMEM
        pool_ref, wlin_ref, blin_ref, out_ref = refs[1 + num_layers:]

        bb, w, d = hidden_refs[0].shape
        c_pad = wlin_ref.shape[1]
        t = pool_ref.shape[1]

        # ScalarMix: weighted layer sum, f32 accumulation (v5e has no bf16 VALU).
        mixed = wmix_ref[0] * hidden_refs[0][...].astype(jnp.float32)        # (BB, W, D)
        for l in range(1, num_layers):
            mixed = mixed + wmix_ref[l] * hidden_refs[l][...].astype(jnp.float32)
        mixed_bf16 = mixed.astype(jnp.bfloat16)   # bf16 operands for native MXU rate

        if pool_first:
            # Pool first (cheaper when T*D*(W+C_pad) <= C_pad*W*(D+T)):
            #   (BB,T,W)@(BB,W,D) -> (BB,T,D), then one tall-M (BB*T,D)@(D,C_pad) dot.
            pooled = jnp.einsum("btw,bwd->btd", pool_ref[...], mixed_bf16,
                                preferred_element_type=jnp.float32)          # (BB, T, D)
            logits = jnp.dot(pooled.reshape(bb * t, d).astype(jnp.bfloat16),
                             wlin_ref[...],
                             preferred_element_type=jnp.float32)             # (BB*T, C_pad)
            logits = logits.reshape(bb, t, c_pad)
        else:
            # Project first (tall M = BB*W), then per-batch pooling over W.
            proj = jnp.dot(mixed_bf16.reshape(bb * w, d), wlin_ref[...],
                           preferred_element_type=jnp.float32)               # (BB*W, C_pad)
            proj = proj.reshape(bb, w, c_pad)
            logits = jnp.einsum("btw,bwc->btc", pool_ref[...],
                                proj.astype(jnp.bfloat16),
                                preferred_element_type=jnp.float32)          # (BB, T, C_pad)

        out_ref[...] = (logits + blin_ref[...]).astype(out_ref.dtype)

    return kernel


def xpos_head_forward(hidden_list, token_spans, tree_is_gold, tags,
                      mix_scalars, mix_gamma, lin_weight, lin_bias,
                      use_layer_mix=True, use_gold_tags_only=False):
    B, Wp, D = hidden_list[0].shape
    S = token_spans.shape[1]
    T = S - 2                                    # tokens after CLS/SEP drop (== tags.shape[1])
    C = lin_weight.shape[0]
    C_pad = _cdiv(C, 128) * 128                  # lane-dense output / MXU N dim

    # ---- pool_embeddings as a mean-pool matrix (glue) ----
    # TODO(synk): pool_embeddings source not provided; assuming mean pooling over
    #             half-open [start, end) wordpiece spans (padding span (0,0) -> zeros).
    w_idx = jnp.arange(Wp, dtype=jnp.int32)[None, None, :]          # (1, 1, W)
    starts = token_spans[..., 0][..., None]                         # (B, S, 1)
    ends = token_spans[..., 1][..., None]                           # (B, S, 1)
    in_span = (w_idx >= starts) & (w_idx < ends)
    widths = jnp.maximum(ends - starts, 1).astype(jnp.float32)
    pool_full = in_span.astype(jnp.float32) / widths                # (B, S, W)
    pool = pool_full[:, 1:S - 1, :].astype(jnp.bfloat16)            # drop CLS/SEP -> (B, T, W) bf16

    # ---- ScalarMix weights (glue; applied inside kernel from SMEM) ----
    if use_layer_mix:
        layers = list(hidden_list)
        wmix = (mix_gamma * jax.nn.softmax(mix_scalars.astype(jnp.float32))).astype(jnp.float32)
    else:
        layers = [hidden_list[-1]]               # only the last layer is read at all
        wmix = jnp.ones((1,), jnp.float32)
    L = len(layers)

    # Linear weights: transposed, zero-padded to lane-dense C_pad, bf16 for the MXU.
    # (Could be hoisted out of the per-call graph by the caller; kept here for self-containment.)
    wlin_t = jnp.zeros((D, C_pad), jnp.bfloat16).at[:, :C].set(lin_weight.astype(jnp.bfloat16).T)
    bias2d = jnp.zeros((1, C_pad), jnp.float32).at[:, :C].set(lin_bias.astype(jnp.float32))

    # ---- data-driven matmul ordering (per-batch-row MXU FLOP comparison) ----
    cost_proj_first = C_pad * Wp * (D + T)
    cost_pool_first = T * D * (Wp + C_pad)
    pool_first = cost_pool_first <= cost_proj_first

    # ---- generation-aware VMEM budgeting & batch-block (BB) selection ----
    vmem_cap = _vmem_capacity_bytes()                         # 64 MiB (v7x) / 128 MiB (v5e,v6e)
    vmem_limit = max(32 * 1024 * 1024,
                     min(vmem_cap - 16 * 1024 * 1024, 100 * 1024 * 1024))
    budget = int(vmem_limit * 0.85)                           # headroom for compiler scratch

    hid_bytes = jnp.dtype(layers[0].dtype).itemsize
    # Double-buffered pipelined IO blocks, per batch element:
    io_per_b = 2 * (L * Wp * D * hid_bytes + T * Wp * 2 + T * C_pad * 4)
    # In-kernel intermediates (mixed f32+bf16, pooled-or-proj f32+bf16, logits f32):
    if pool_first:
        tmp_per_b = Wp * D * (4 + 2) + T * D * (4 + 2) + T * C_pad * 4
    else:
        tmp_per_b = Wp * D * (4 + 2) + Wp * C_pad * (4 + 2) + T * C_pad * 4
    per_b = io_per_b + tmp_per_b
    fixed = 2 * (D * C_pad * 2 + C_pad * 4)                   # wlin(bf16) + bias blocks

    # Never collapse the grid: keep G >= 2 (>= 4 when the batch allows) so the pipeline
    # can overlap DMA with compute and both v7x TensorCores get work.
    G_min = 1 if B <= 1 else (2 if B < 4 else 4)
    BB = 1
    for cand in (32, 16, 8, 4, 2, 1):
        if fixed + cand * per_b > budget:
            continue
        if _cdiv(B, cand) < G_min:
            continue
        BB = cand
        break
    # TODO(synk): for very large L*W*D a single batch element may exceed VMEM; an
    #             'arbitrary' L grid axis accumulating the mix would be needed then.
    G = _cdiv(B, BB)
    B_pad = G * BB

    # Pad the batch instead of requiring B % BB == 0 (padded rows are sliced off below).
    if B_pad != B:
        pad = B_pad - B
        layers = [jnp.pad(h, ((0, pad), (0, 0), (0, 0))) for h in layers]
        pool = jnp.pad(pool, ((0, pad), (0, 0), (0, 0)))

    in_specs = [pl.BlockSpec(memory_space=pltpu.MemorySpace.SMEM)]            # wmix (L,)
    in_specs += [pl.BlockSpec((BB, Wp, D), lambda g: (g, 0, 0))] * L          # hidden layers
    in_specs += [
        pl.BlockSpec((BB, T, Wp), lambda g: (g, 0, 0)),                       # pool matrix (bf16)
        pl.BlockSpec((D, C_pad), lambda g: (0, 0)),                           # linear weight^T (bf16)
        pl.BlockSpec((1, C_pad), lambda g: (0, 0)),                           # bias (f32)
    ]

    logits_pad = pl.pallas_call(
        _make_xpos_kernel(L, pool_first),
        out_shape=jax.ShapeDtypeStruct((B_pad, T, C_pad), jnp.float32),
        grid_spec=pltpu.PrefetchScalarGridSpec(
            num_scalar_prefetch=0,
            grid=(G,),
            in_specs=in_specs,
            out_specs=pl.BlockSpec((BB, T, C_pad), lambda g: (g, 0, 0)),
        ),
        compiler_params=pltpu.CompilerParams(
            dimension_semantics=("parallel",),
            vmem_limit_bytes=vmem_limit,
        ),
    )(wmix, *layers, pool, wlin_t, bias2d)

    logits = logits_pad[:B, :, :C]               # drop batch padding + padded tag columns (glue)

    # ---- post-processing (glue) ----
    token_counts = jnp.sum(jnp.all(token_spans != 0, axis=-1), axis=-1) - 1   # (B,)
    mask = jnp.arange(T, dtype=jnp.int32)[None, :] < token_counts[:, None]    # (B, T) bool
    if use_gold_tags_only:
        mask = mask & (tree_is_gold[:, None] != 0)

    # Faithfully replicates torch F.softmax(logits) with implicit dim (dim=0 for 3-D input).
    # TODO(synk): almost certainly a latent bug in the reference (per-class softmax would be
    #             axis=-1); kept as-is to preserve the original module's semantics.
    class_probs = jax.nn.softmax(logits, axis=0)
    preds = jnp.argmax(class_probs, axis=-1).astype(jnp.int32)

    outputs = {"logits": logits, "preds": preds * mask}
    # TODO(synk): loss (sequence_cross_entropy_with_logits) and torchmetrics Accuracy are
    #             external stateful metrics/utilities and are not reproduced here.
    return outputs


if __name__ == "__main__":
    key = jax.random.PRNGKey(0)
    L, B, Wp, D, C, S = 3, 2, 16, 32, 16, 10   # layers, batch, wordpieces, emb_dim, num_tags, spans
    T = S - 2

    k1, k2, k3, k4, k5 = jax.random.split(key, 5)
    # Encoder hidden states kept bf16 end-to-end (halves HBM traffic on the dominant read).
    hidden_list = [jax.random.normal(k, (B, Wp, D), jnp.float32).astype(jnp.bfloat16)
                   for k in jax.random.split(k1, L)]
    token_spans = jnp.array([
        [[0, 1], [1, 3], [3, 4], [4, 6], [6, 7], [7, 9], [9, 11], [11, 12], [12, 14], [14, 15]],
        [[0, 1], [1, 2], [2, 4], [4, 5], [5, 7], [7, 8], [8, 9], [0, 0], [0, 0], [0, 0]],
    ], dtype=jnp.int32)                                    # (B, S, 2)
    tree_is_gold = jnp.array([1, 0], dtype=jnp.int32)      # (B,)
    tags = jax.random.randint(k2, (B, T), 0, C, dtype=jnp.int32)

    # Deterministic parameter init (synthetic, not a checkpoint load).
    mix_scalars = jax.random.normal(k3, (L,), jnp.float32) * 0.1   # ScalarMix scalars
    mix_gamma = jnp.float32(1.0)                                   # ScalarMix gamma
    bound = 1.0 / (D ** 0.5)
    lin_weight = jax.random.uniform(k4, (C, D), jnp.float32, -bound, bound)  # torch Linear layout
    lin_bias = jax.random.uniform(k5, (C,), jnp.float32, -bound, bound)

    out = xpos_head_forward(hidden_list, token_spans, tree_is_gold, tags,
                            mix_scalars, mix_gamma, lin_weight, lin_bias,
                            use_layer_mix=True, use_gold_tags_only=False)
    jax.block_until_ready(out["logits"])
    jax.block_until_ready(out["preds"])
    print("KERNEL_OK")
</pallas_src>

<mosaic_0001>
module attributes {stable_mosaic.version = 11 : i64} {
  func.func @kernel(%arg0: i32, %arg1: memref<3xf32, #tpu.memory_space<smem>>, %arg2: memref<1x16x32xbf16, #tpu.memory_space<vmem>>, %arg3: memref<1x16x32xbf16, #tpu.memory_space<vmem>>, %arg4: memref<1x16x32xbf16, #tpu.memory_space<vmem>>, %arg5: memref<1x8x16xbf16, #tpu.memory_space<vmem>>, %arg6: memref<32x128xbf16, #tpu.memory_space<vmem>>, %arg7: memref<1x128xf32, #tpu.memory_space<vmem>>, %arg8: memref<1x8x128xf32, #tpu.memory_space<vmem>>) attributes {dimension_semantics = [#tpu.dimension_semantics<parallel>], iteration_bounds = array<i64: 2>, scalar_prefetch = 0 : i64, scratch_operands = 0 : i64, tpu.core_type = #tpu.core_type<tc>, window_params = [{transform_indices = @transform_0, window_bounds = array<i64: 3>}, {transform_indices = @transform_1, window_bounds = array<i64: 1, 16, 32>}, {transform_indices = @transform_2, window_bounds = array<i64: 1, 16, 32>}, {transform_indices = @transform_3, window_bounds = array<i64: 1, 16, 32>}, {transform_indices = @transform_4, window_bounds = array<i64: 1, 8, 16>}, {pipeline_mode = #tpu.pipeline_mode<synchronous>, transform_indices = @transform_5, window_bounds = array<i64: 32, 128>}, {pipeline_mode = #tpu.pipeline_mode<synchronous>, transform_indices = @transform_6, window_bounds = array<i64: 1, 128>}, {transform_indices = @transform_7, window_bounds = array<i64: 1, 8, 128>}]} {
    %c0 = arith.constant 0 : index
    %0 = memref.load %arg1[%c0] : memref<3xf32, #tpu.memory_space<smem>>
    %c0_0 = arith.constant 0 : index
    %c0_1 = arith.constant 0 : index
    %c0_2 = arith.constant 0 : index
    %1 = vector.load %arg2[%c0_0, %c0_1, %c0_2] : memref<1x16x32xbf16, #tpu.memory_space<vmem>>, vector<1x16x32xbf16>
    %2 = arith.extf %1 : vector<1x16x32xbf16> to vector<1x16x32xf32>
    %3 = vector.broadcast %0 : f32 to vector<1x16x32xf32>
    %4 = arith.mulf %3, %2 : vector<1x16x32xf32>
    %c1 = arith.constant 1 : index
    %5 = memref.load %arg1[%c1] : memref<3xf32, #tpu.memory_space<smem>>
    %c0_3 = arith.constant 0 : index
    %c0_4 = arith.constant 0 : index
    %c0_5 = arith.constant 0 : index
    %6 = vector.load %arg3[%c0_3, %c0_4, %c0_5] : memref<1x16x32xbf16, #tpu.memory_space<vmem>>, vector<1x16x32xbf16>
    %7 = arith.extf %6 : vector<1x16x32xbf16> to vector<1x16x32xf32>
    %8 = vector.broadcast %5 : f32 to vector<1x16x32xf32>
    %9 = arith.mulf %8, %7 : vector<1x16x32xf32>
    %10 = arith.addf %4, %9 : vector<1x16x32xf32>
    %c2 = arith.constant 2 : index
    %11 = memref.load %arg1[%c2] : memref<3xf32, #tpu.memory_space<smem>>
    %c0_6 = arith.constant 0 : index
    %c0_7 = arith.constant 0 : index
    %c0_8 = arith.constant 0 : index
    %12 = vector.load %arg4[%c0_6, %c0_7, %c0_8] : memref<1x16x32xbf16, #tpu.memory_space<vmem>>, vector<1x16x32xbf16>
    %13 = arith.extf %12 : vector<1x16x32xbf16> to vector<1x16x32xf32>
    %14 = vector.broadcast %11 : f32 to vector<1x16x32xf32>
    %15 = arith.mulf %14, %13 : vector<1x16x32xf32>
    %16 = arith.addf %10, %15 : vector<1x16x32xf32>
    %17 = arith.truncf %16 : vector<1x16x32xf32> to vector<1x16x32xbf16>
    %c0_9 = arith.constant 0 : index
    %c0_10 = arith.constant 0 : index
    %c0_11 = arith.constant 0 : index
    %18 = vector.load %arg5[%c0_9, %c0_10, %c0_11] : memref<1x8x16xbf16, #tpu.memory_space<vmem>>, vector<1x8x16xbf16>
    "tpu.trace_start"() <{level = 10 : i32, message = "btw,bwd->btd"}> : () -> ()
    %cst = arith.constant dense<0.000000e+00> : vector<1x8x32xf32>
    %19 = tpu.matmul %18, %17, %cst {dimension_numbers = #tpu.dot_dimension_numbers<[2], [1], [1], [2], [0, 0, 0, 1, 1, 2], [0], [0]>} : vector<1x8x16xbf16>, vector<1x16x32xbf16>, vector<1x8x32xf32> -> vector<1x8x32xf32>
    "tpu.trace_stop"() : () -> ()
    %20 = vector.shape_cast %19 : vector<1x8x32xf32> to vector<8x32xf32>
    %21 = arith.truncf %20 : vector<8x32xf32> to vector<8x32xbf16>
    %c0_12 = arith.constant 0 : index
    %c0_13 = arith.constant 0 : index
    %22 = vector.load %arg6[%c0_12, %c0_13] : memref<32x128xbf16, #tpu.memory_space<vmem>>, vector<32x128xbf16>
    %cst_14 = arith.constant dense<0.000000e+00> : vector<8x128xf32>
    %23 = tpu.matmul %21, %22, %cst_14 {dimension_numbers = #tpu.dot_dimension_numbers<[1], [0], [0], [1], [0, 0, 1, 1], [], []>} : vector<8x32xbf16>, vector<32x128xbf16>, vector<8x128xf32> -> vector<8x128xf32>
    %24 = vector.shape_cast %23 : vector<8x128xf32> to vector<1x8x128xf32>
    %c0_15 = arith.constant 0 : index
    %c0_16 = arith.constant 0 : index
    %25 = vector.load %arg7[%c0_15, %c0_16] : memref<1x128xf32, #tpu.memory_space<vmem>>, vector<1x128xf32>
    %26 = vector.shape_cast %25 : vector<1x128xf32> to vector<1x1x128xf32>
    %27 = vector.broadcast %26 : vector<1x1x128xf32> to vector<1x8x128xf32>
    %28 = arith.addf %24, %27 : vector<1x8x128xf32>
    %c0_17 = arith.constant 0 : index
    %c0_18 = arith.constant 0 : index
    %c0_19 = arith.constant 0 : index
    %29 = vector.load %arg8[%c0_17, %c0_18, %c0_19] : memref<1x8x128xf32, #tpu.memory_space<vmem>>, vector<1x8x128xf32>
    tpu.vector_store %arg8[%c0_17, %c0_18, %c0_19], %28 {strides = array<i32>} : memref<1x8x128xf32, #tpu.memory_space<vmem>>, vector<1x8x128xf32>,
    return
  }
  func.func @transform_0(%arg0: i32) -> i32 {
    %c0_i32 = arith.constant 0 : i32
    %c0_i32_0 = arith.constant 0 : i32
    return %c0_i32 : i32
  }
  func.func @transform_1(%arg0: i32) -> (i32, i32, i32) {
    %c0_i32 = arith.constant 0 : i32
    %c0_i32_0 = arith.constant 0 : i32
    %c0_i32_1 = arith.constant 0 : i32
    return %arg0, %c0_i32, %c0_i32_0 : i32, i32, i32
  }
  func.func @transform_2(%arg0: i32) -> (i32, i32, i32) {
    %c0_i32 = arith.constant 0 : i32
    %c0_i32_0 = arith.constant 0 : i32
    %c0_i32_1 = arith.constant 0 : i32
    return %arg0, %c0_i32, %c0_i32_0 : i32, i32, i32
  }
  func.func @transform_3(%arg0: i32) -> (i32, i32, i32) {
    %c0_i32 = arith.constant 0 : i32
    %c0_i32_0 = arith.constant 0 : i32
    %c0_i32_1 = arith.constant 0 : i32
    return %arg0, %c0_i32, %c0_i32_0 : i32, i32, i32
  }
  func.func @transform_4(%arg0: i32) -> (i32, i32, i32) {
    %c0_i32 = arith.constant 0 : i32
    %c0_i32_0 = arith.constant 0 : i32
    %c0_i32_1 = arith.constant 0 : i32
    return %arg0, %c0_i32, %c0_i32_0 : i32, i32, i32
  }
  func.func @transform_5(%arg0: i32) -> (i32, i32) {
    %c0_i32 = arith.constant 0 : i32
    %c0_i32_0 = arith.constant 0 : i32
    %c0_i32_1 = arith.constant 0 : i32
    return %c0_i32, %c0_i32_0 : i32, i32
  }
  func.func @transform_6(%arg0: i32) -> (i32, i32) {
    %c0_i32 = arith.constant 0 : i32
    %c0_i32_0 = arith.constant 0 : i32
    %c0_i32_1 = arith.constant 0 : i32
    return %c0_i32, %c0_i32_0 : i32, i32
  }
  func.func @transform_7(%arg0: i32) -> (i32, i32, i32) {
    %c0_i32 = arith.constant 0 : i32
    %c0_i32_0 = arith.constant 0 : i32
    %c0_i32_1 = arith.constant 0 : i32
    return %arg0, %c0_i32, %c0_i32_0 : i32, i32, i32
  }
}

</mosaic_0001>

<bundles_post_ra>
// kernel: tpu_custom_call.1
= control target key start
LH: loop header
LB: loop body
LE: loop exit
PB: predicated region body
PF: predicated region fallthrough
CT: control target
= control target key end

     0   :  { %s1476_s0 = inlined_call_operand.hbm [shape: f32[3], index: 0, kind: input, shape index: {}]   ;;  %s1477_s1 = inlined_call_operand.hbm [shape: bf16[2,16,32], index: 1, kind: input, shape index: {}]   ;;  %s1478_s2 = inlined_call_operand.hbm [shape: bf16[2,16,32], index: 2, kind: input, shape index: {}]   ;;  %s1479_s3 = inlined_call_operand.hbm [shape: bf16[2,16,32], index: 3, kind: input, shape index: {}]   ;;  %s1480_s4 = inlined_call_operand.hbm [shape: bf16[2,8,16], index: 4, kind: input, shape index: {}]   ;;  %s1481_s5 = inlined_call_operand.vmem [shape: bf16[32,128], index: 5, kind: input, shape index: {}]   ;;  %s1482_s6 = inlined_call_operand.vmem [shape: f32[1,128], index: 6, kind: input, shape index: {}]   ;;  %s1483_s7 = inlined_call_operand.hbm [shape: f32[2,8,128], index: 7, kind: output, shape index: {}]  }
   0x1   :  { %1500 = sst [smem:[#allocation23_spill]] %s1477_s1 }
   0x2   :  { %1501 = sst [smem:[#allocation24_spill]] %s1478_s2 }
   0x3   :  { %12 = vsyncpa [#allocation5], 0 }
   0x4   :  { %13 = vsyncpa [#allocation3], 0 }
   0x5   :  { %15 = vsyncpa [#allocation3 + $0x1], 0 }
   0x6   :  { %16 = vsyncpa [#allocation8], 0 }
   0x7   :  { %18 = vsyncpa [#allocation8 + $0x1], 0 }
   0x8   :  { %19 = vsyncpa [#allocation11], 0 }
   0x9   :  { %21 = vsyncpa [#allocation11 + $0x1], 0 }
   0xa   :  { %22 = vsyncpa [#allocation4], 0 }
   0xb   :  { %24 = vsyncpa [#allocation4 + $0x1], 0  ;;  %s1138_s24 = smov 0   ;;  %s1140_s25 = smov 0  }
   0xc   :  { %s1142_s26 = smov 0   ;;  %s1144_s27 = smov 0  }
   0xd LB: > { %1502 = sst [smem:[#allocation18_spill]] %s1074_s24  ;;  %s1159_s28 = sadd.s32 1, %s1086_s27   ;;  %s1086_s27 = sphi %s1144_s27, %s1532_s27   ;;  %s1082_s26 = sphi %s1142_s26, %s1534_s26   ;;  %s1078_s25 = sphi %s1140_s25, %s1536_s25   ;;  %s1074_s24 = sphi %s1138_s24, %s1535_s24  }
   0xe   : > { %1503 = sst [smem:[#allocation19_spill]] %s1082_s26  ;;  %s58_s29 = sadd.s32 1, %s1082_s26 }
   0xf   : > { %1504 = sst [smem:[#allocation20_spill]] %s1159_s28  ;;  %s55_s30 = ssub.s32 %s1086_s27, %s1159_s28 }
  0x10   : > { %p1484_p0 = scmp.ne.s32.totalorder %s1082_s26, %s1078_s25  ;;  %p56_p1 = scmp.eq.s32.totalorder %s55_s30, 0 }
  0x11   : > { %p66_p2 = scmp.eq.s32.totalorder %s1086_s27, 0  ;;  %p833_p4 = scmp.lt.s32.totalorder %s1086_s27, 2 }
  0x12   : > { %s1170_s8 = scalar_select %p56_p1, %s1082_s26, %s58_s29  }
  0x13   : > { %p67_p5 = por %p66_p2, %p1484_p0  ;;  %s1176_s9 = sand.u32 1, %s1082_s26  }
  0x14   : > { %1505 = sst [smem:[#allocation21_spill]] %s1170_s8  ;;  %s1179_s10 = sshll.u32 %s1176_s9, 3 }
  0x15   : > { %s1182_s11 = sshll.u32 %s1086_s27, 7  ;;  %p1184_p6 = pnand %p833_p4, %p67_p5 }
  0x16   : > { %s277_s13 = sand.u32 1, %s1086_s27   ;;  %s1507_s2 = sld [smem:[#allocation24_spill]] }
  0x17   : > { %s1506_s12 = scalar_select %p1184_p6, 1, 0 }
  0x18   : > { %s281_s17 = scalar_lea.vmem [#allocation7], %s1179_s10  ;;  %s1198_s19 = scalar_lea.sflag [#allocation8], %s277_s13 }
  0x19   : > { %s288_s18 = sshll.u32 %s281_s17, 4  ;;  %p1204_p8 = pneg %p1184_p6  ;;  %s1196_s18 = int_to_ptr.vmem [resolvable:$true] %s288_s18 }
  0x1c   : > { %s1193_s16 = scalar_lea.hbm %s1507_s2, %s1182_s11  ;;  %s880_s29 = scalar_lea.hbm %s1507_s2, 256 }
  0x1d   : > { %s875_s20 = scalar_lea.hbm %s1193_s16, 128  ;;  %p881_p11 = scmp.lt.u32.totalorder %s1193_s16, %s1507_s2 }
  0x1e   : > { %p876_p7 = scmp.ne.s32.totalorder %s1193_s16, %s875_s20  ;;  %p882_p12 = scmp.lt.u32.totalorder %s880_s29, %s875_s20 }
  0x1f   : > { %p884_p1 = scmp.lt.u32.totalorder %s875_s20, %s1193_s16 }
  0x20   : > { %p878_p9 = pnand %p1204_p8, %p876_p7  ;;  %p883_p13 = por %p882_p12, %p881_p11 }
  0x22   : > { %p879_p10 = pneg %p878_p9  ;;  %p885_p2 = por %p884_p1, %p883_p13 }
  0x24   : > { %p886_p4 = pnand %p885_p2, %p879_p10 }
  0x26   : > { %889 = shalt.err (!%p886_p4)
}
  0x27   : > { %s890_s13 = scalar_lea.vmem %s1196_s18, 128  ;;  %s1088_s15 = smov [#allocation7]  }
  0x28   : > { %p891_p5 = scmp.ne.s32.totalorder %s1196_s18, %s890_s13  ;;  %s895_s17 = sshll.u32 %s1088_s15, 4  ;;  %s896_s17 = int_to_ptr.vmem [resolvable:$false] %s895_s17 }
  0x29   : > { %s897_s22 = scalar_lea.vmem %s896_s17, 256  ;;  %p898_p3 = scmp.lt.s32.totalorder %s1196_s18, %s896_s17 }
  0x2a   : > { %p893_p7 = pnand %p891_p5, %p1204_p8  ;;  %p899_p0 = scmp.lt.s32.totalorder %s897_s22, %s890_s13 }
  0x2c   : > { %p894_p9 = pneg %p893_p7  ;;  %p900_p11 = por %p899_p0, %p898_p3 }
  0x2e   : > { %p901_p12 = pnand %p900_p11, %p894_p9 }
  0x30   : > { %904 = shalt.err (!%p901_p12)
}
  0x31   : > { %s1485_s20 = smov 64   ;;  %s1487_s23 = smov 4  }
  0x32   : > { %821 = dma.hbm_to_vmem [thread:$0]  (!%p1184_p6), %s1193_s16, 128, %s1196_s18, %s1198_s19, %s1485_s20, %s1485_s20, %s1487_s23  }
  0x33   : > { %s1232_s29 = sadd.s32 4294967295, %s1086_s27   ;;  %s730_s30 = sadd.s32 4294967294, %s1086_s27  }
  0x34   : > { %p71_p0 = scmp.ne.s32.totalorder %s1078_s25, %s1074_s24  ;;  %p1492_p3 = scmp.eq.s32.totalorder %s1232_s29, 0 }
  0x35   : > { %p215_p10 = scmp.eq.s32.totalorder %s1232_s29, 1  ;;  %p221_p13 = scmp.eq.s32.totalorder %s730_s30, 1 }
  0x36   : > { %p1241_p1 = por %p1492_p3, %p71_p0  ;;  %p731_p2 = scmp.ge.s32.totalorder %s1086_s27, 1 }
  0x37   : > { %p1510_p4 = scmp.ne.s32.totalorder %s1082_s26, %s1078_s25  ;;  %p1253_p7 = por %p221_p13, %p71_p0 }
  0x38   : > { %s1509_s14 = scalar_select %p1241_p1, 1, 0 }
  0x39   : > { %p1249_p5 = por %p215_p10, %p1510_p4  ;;  %p228_p9 = scmp.lt.s32.totalorder %s1086_s27, 3 }
  0x3a   : > { %s1512_s18 = scalar_select %p1253_p7, 1, 0 }
  0x3b   : > { %s1511_s16 = scalar_select %p1249_p5, 1, 0 }
  0x3c   : > { %1513 = sst [smem:[#allocation22_spill]] %s1512_s18  ;;  %p1258_p11 = pnand %p731_p2, %p228_p9 }
  0x3d   : > { %s1515_s1 = sld [smem:[#allocation23_spill]]  ;;  %s260_s30 = scalar_lea.vmem [#allocation6], %s1179_s10 }
  0x3e   : > { %s1514_s13 = scalar_select %p1258_p11, 1, 0 }
  0x3f   : > { %s267_s20 = sshll.u32 %s260_s30, 4  ;;  %s257_s23 = scalar_lea.sflag [#allocation3], %s1176_s9  ;;  %s1271_s20 = int_to_ptr.vmem [resolvable:$true] %s267_s20 }
  0x43   : > { %s1266_s22 = scalar_lea.hbm %s1515_s1, %s1182_s11  ;;  %s910_s8 = scalar_lea.hbm %s1515_s1, 256 }
  0x44   : > { %s905_s2 = scalar_lea.hbm %s1266_s22, 128  ;;  %p911_p2 = scmp.lt.u32.totalorder %s1266_s22, %s1515_s1 }
  0x45   : > { %p906_p0 = scmp.ne.s32.totalorder %s1266_s22, %s905_s2  ;;  %p912_p4 = scmp.lt.u32.totalorder %s910_s8, %s905_s2 }
  0x46   : > { %p914_p3 = scmp.lt.u32.totalorder %s905_s2, %s1266_s22 }
  0x47   : > { %p908_p10 = pnand %p906_p0, %p1204_p8  ;;  %p913_p9 = por %p912_p4, %p911_p2 }
  0x49   : > { %p909_p13 = pneg %p908_p10  ;;  %p915_p12 = por %p914_p3, %p913_p9 }
  0x4b   : > { %p916_p7 = pnand %p915_p12, %p909_p13 }
  0x4d   : > { %919 = shalt.err (!%p916_p7)
}
  0x4e   : > { %s920_s30 = scalar_lea.vmem %s1271_s20, 128  ;;  %s1091_s15 = smov [#allocation6]  }
  0x4f   : > { %p921_p0 = scmp.ne.s32.totalorder %s1271_s20, %s920_s30  ;;  %s925_s17 = sshll.u32 %s1091_s15, 4  ;;  %s926_s17 = int_to_ptr.vmem [resolvable:$false] %s925_s17 }
  0x50   : > { %s927_s26 = scalar_lea.vmem %s926_s17, 256  ;;  %p928_p1 = scmp.lt.s32.totalorder %s1271_s20, %s926_s17 }
  0x51   : > { %p923_p10 = pnand %p921_p0, %p1204_p8  ;;  %p929_p11 = scmp.lt.s32.totalorder %s927_s26, %s920_s30 }
  0x53   : > { %p924_p5 = pneg %p923_p10  ;;  %p930_p2 = por %p929_p11, %p928_p1 }
  0x55   : > { %p931_p4 = pnand %p930_p2, %p924_p5 }
  0x57   : > { %934 = shalt.err (!%p931_p4)
}
  0x58   : > { %s1516_s2 = smov 4   ;;  %s1517_s28 = smov 64  }
  0x59   : > { %818 = dma.hbm_to_vmem [thread:$0]  (!%p1184_p6), %s1266_s22, 128, %s1271_s20, %s257_s23, %s1517_s28, %s1517_s28, %s1516_s2  }
  0x5a   : > { %p1518_p3 = scmp.eq.s32.totalorder %s1232_s29, 0  ;;  %p1519_p7 = scmp.ne.s32.totalorder %s1514_s13, 0 }
  0x5b   : > { %s1313_s17 = scalar_lea.hbm %s1479_s3, %s1182_s11  ;;  %s302_s26 = scalar_lea.vmem [#allocation9], %s1179_s10 }
  0x5c   : > { %p1520_p12 = pneg %p1519_p7  ;;  %s309_s1 = sshll.u32 %s302_s26, 4  ;;  %s1316_s1 = int_to_ptr.vmem [resolvable:$true] %s309_s1 }
  0x5d   : > { %s935_s20 = scalar_lea.hbm %s1476_s0, 16 }
  0x5e   : > { %p1305_p1 = pnand %p1520_p12, %p1518_p3  ;;  %p936_p5 = scmp.ne.s32.totalorder %s1476_s0, %s935_s20 }
  0x5f   : > { %p942_p0 = scmp.lt.u32.totalorder %s935_s20, %s1476_s0 }
  0x60   : > { %p937_p11 = pneg %p1305_p1 }
  0x62   : > { %p938_p13 = pnand %p937_p11, %p936_p5 }
  0x64   : > { %p939_p9 = pneg %p938_p13 }
  0x66   : > { %p944_p10 = pnand %p942_p0, %p939_p9 }
  0x68   : > { %947 = shalt.err (!%p944_p10)
}
  0x69   : > { %s1092_s10 = smov [#allocation2]   ;;  %s948_s18 = scalar_lea.hbm %s1313_s17, 128 }
  0x6a   : > { %814 = dma.hbm_to_smem (!%p1305_p1), %s1476_s0, 16, %s1092_s10, [#allocation5]  }
  0x6b   : > { %p949_p2 = scmp.ne.s32.totalorder %s1313_s17, %s948_s18  ;;  %s953_s23 = scalar_lea.hbm %s1479_s3, 256 }
  0x6c   : > { %p954_p12 = scmp.lt.u32.totalorder %s1313_s17, %s1479_s3  ;;  %p955_p5 = scmp.lt.u32.totalorder %s953_s23, %s948_s18 }
  0x6d   : > { %p951_p4 = pnand %p949_p2, %p1204_p8  ;;  %p957_p13 = scmp.lt.u32.totalorder %s948_s18, %s1313_s17 }
  0x6e   : > { %p956_p11 = por %p955_p5, %p954_p12 }
  0x6f   : > { %p952_p3 = pneg %p951_p4 }
  0x70   : > { %p958_p9 = por %p957_p13, %p956_p11 }
  0x72   : > { %p959_p0 = pnand %p958_p9, %p952_p3 }
  0x74   : > { %962 = shalt.err (!%p959_p0)
}
  0x75   : > { %s963_s30 = scalar_lea.vmem %s1316_s1, 128  ;;  %s1093_s15 = smov [#allocation9]  }
  0x76   : > { %p964_p1 = scmp.ne.s32.totalorder %s1316_s1, %s963_s30  ;;  %s968_s10 = sshll.u32 %s1093_s15, 4  ;;  %s969_s10 = int_to_ptr.vmem [resolvable:$false] %s968_s10 }
  0x77   : > { %s970_s11 = scalar_lea.vmem %s969_s10, 256  ;;  %p971_p4 = scmp.lt.s32.totalorder %s1316_s1, %s969_s10 }
  0x78   : > { %p966_p10 = pnand %p964_p1, %p1204_p8  ;;  %p972_p7 = scmp.lt.s32.totalorder %s970_s11, %s963_s30 }
  0x7a   : > { %p967_p2 = pneg %p966_p10  ;;  %p973_p12 = por %p972_p7, %p971_p4 }
  0x7c   : > { %p974_p5 = pnand %p973_p12, %p967_p2 }
  0x7e   : > { %977 = shalt.err (!%p974_p5)
}
  0x7f   : > { %824 = dma.hbm_to_vmem [thread:$0]  (!%p1184_p6), %s1313_s17, 128, %s1316_s1, %s1198_s19, %s1517_s28, %s1517_s28, %s1516_s2  }
  0x80   : > { %s743_s24 = sshll.u32 %s1176_s9, 2  ;;  %s744_s18 = sshll.u32 %s1086_s27, 6 }
  0x81   : > { %s1364_s23 = scalar_lea.hbm %s1480_s4, %s744_s18  ;;  %s323_s22 = scalar_lea.vmem [#allocation10], %s743_s24 }
  0x82   : > { %s330_s8 = sshll.u32 %s323_s22, 4  ;;  %s320_s30 = scalar_lea.sflag [#allocation11], %s1176_s9  ;;  %s331_s8 = int_to_ptr.vmem [resolvable:$true] %s330_s8 }
  0x83   : > { %s978_s15 = scalar_lea.hbm %s1364_s23, 64  ;;  %s983_s2 = scalar_lea.hbm %s1480_s4, 128 }
  0x84   : > { %p979_p7 = scmp.ne.s32.totalorder %s1364_s23, %s978_s15  ;;  %p984_p13 = scmp.lt.u32.totalorder %s1364_s23, %s1480_s4 }
  0x85   : > { %p985_p9 = scmp.lt.u32.totalorder %s983_s2, %s978_s15  ;;  %p987_p1 = scmp.lt.u32.totalorder %s978_s15, %s1364_s23 }
  0x86   : > { %p981_p3 = pnand %p979_p7, %p1204_p8 }
  0x87   : > { %p986_p0 = por %p985_p9, %p984_p13 }
  0x88   : > { %p982_p11 = pneg %p981_p3 }
  0x89   : > { %p988_p10 = por %p987_p1, %p986_p0 }
  0x8b   : > { %p989_p2 = pnand %p988_p10, %p982_p11 }
  0x8d   : > { %992 = shalt.err (!%p989_p2)
}
  0x8e   : > { %s993_s9 = scalar_lea.vmem %s331_s8, 64  ;;  %s1094_s10 = smov [#allocation10]  }
  0x8f   : > { %p994_p4 = scmp.ne.s32.totalorder %s331_s8, %s993_s9  ;;  %s998_s11 = sshll.u32 %s1094_s10, 4  ;;  %s999_s11 = int_to_ptr.vmem [resolvable:$false] %s998_s11 }
  0x90   : > { %s1000_s24 = scalar_lea.vmem %s999_s11, 128  ;;  %p1001_p7 = scmp.lt.s32.totalorder %s331_s8, %s999_s11 }
  0x91   : > { %p996_p12 = pnand %p994_p4, %p1204_p8  ;;  %p1002_p3 = scmp.lt.s32.totalorder %s1000_s24, %s993_s9 }
  0x93   : > { %p997_p5 = pneg %p996_p12  ;;  %p1003_p6 = por %p1002_p3, %p1001_p7 }
  0x95   : > { %p1004_p9 = pnand %p1003_p6, %p997_p5 }
  0x97   : > { %1007 = shalt.err (!%p1004_p9)
}
  0x98   : > { %p1522_p13 = scmp.ne.s32.totalorder %s1506_s12, 0  ;;  %p1523_p11 = scmp.ne.s32.totalorder %s1514_s13, 0 }
  0x99   : > { %p1524_p0 = scmp.eq.s32.totalorder (!%p1523_p11), %s1232_s29, 0 }
  0x9a   : > { %827 = dma.hbm_to_vmem [thread:$0]  (!%p1522_p13), %s1364_s23, 64, %s331_s8, %s320_s30  }
  0x9b   : > { %339 = sbr.rel (%p1523_p11) target bundleno = 635 (0x27b), region = 48 }
  0xa2   : > { %1053 = dma.done.wait (%p1524_p0), [#allocation5], 16   ;;  %p1525_p8 = pmov %p1524_p0 }
  0xa3   : > { %s1391_s21 = sand.u32 1, %s1078_s25   ;;  %p1526_p6 = scmp.ne.s32.totalorder %s1509_s14, 0 }
  0xa4   : > { %1055 = vsyncadd (%p1525_p8), [#allocation5], 4294967280  ;;  %s1394_s18 = sshll.u32 %s1391_s21, 3  ;;  %s346_s12 = scalar_lea.sflag [#allocation3], %s1391_s21 }
  0xa5   : > { %s349_s26 = scalar_lea.vmem [#allocation6], %s1394_s18 }
  0xa6   : > { %1057 = dma.done.wait (%p1526_p6), %s346_s12, 128  }
  0xa7   : > { %1059 = vsyncadd (%p1526_p6), %s346_s12, 4294967168  ;;  %s354_s13 = sand.u32 1, %s1232_s29   ;;  %s358_s23 = scalar_lea.vmem [#allocation7], %s1394_s18 }
  0xa8   : > { %s355_s20 = scalar_lea.sflag [#allocation8], %s354_s13 }
  0xa9   : > { %1061 = dma.done.wait (%p1526_p6), %s355_s20, 256  }
  0xaa   : > { %1063 = vsyncadd (%p1526_p6), %s355_s20, 4294967040  ;;  %s750_s22 = sshll.u32 %s1391_s21, 2  ;;  %s367_s8 = scalar_lea.vmem [#allocation9], %s1394_s18 }
  0xab   : > { %s373_s30 = scalar_lea.sflag [#allocation11], %s1391_s21  ;;  %s1411_s15 = scalar_lea.vmem [#allocation10], %s750_s22 }
  0xac   : > { %1065 = dma.done.wait (%p1526_p6), %s373_s30, 64  }
  0xad   : > { %1067 = vsyncadd (%p1526_p6), %s373_s30, 4294967232 }
  0xae   : > { %381 = sfence }
  0xaf   : > { %s424_s1 = sld [smem:[#allocation2]]  ;;  %v767_v0 = vld [vmem:[%s349_s26] sm:$0xff]   ;;  %s752_s19 = sld [smem:[#allocation2 + $0x1]]  ;;  %v1095_v1 = vmov 0.0   ;;  %v771_v2 = vld [vmem:[%s358_s23] sm:$0xff]   ;;  %vm1096_vm0 = vmmov 0  }
  0xb0   : > { %783 = vmatprep.subr.bf16.mxu0 %v1095_v1  ;;  %s753_s2 = sld [smem:[#allocation2 + $0x2]]  ;;  %789 = vmatprep.subr.bf16.mxu1 %v1095_v1  ;;  %v775_v3 = vld [vmem:[%s367_s8] sm:$0xff]   ;;  %v768_v4 = vunpack.c.l.bf16 %v767_v0  ;;  %v769_v5 = vunpack.c.h.bf16 %v767_v0  ;;  %v772_v6 = vunpack.c.l.bf16 %v771_v2  ;;  %v773_v7 = vunpack.c.h.bf16 %v771_v2  ;;  %v873_v8 = vld [vmem:[%s1481_s5] sm:$0xff]   ;;  %v874_v26 = vld [vmem:[%s1481_s5 + $0x8] sm:$0xff]   ;;  %s760_s24 = sshll.u32 %s1232_s29, 7 }
  0xb1   : > { %785 = vmatprep.mubr.msk.bf16.mxu0 %vm1096_vm0, %v1095_v1  ;;  %793 = vmatprep.mubr.msk.bf16.mxu1 %vm1096_vm0, %v1095_v1  ;;  %v776_v9 = vunpack.c.l.bf16 %v775_v3  ;;  %v777_v10 = vunpack.c.h.bf16 %v775_v3  ;;  %v453_v25 = vld [vmem:[%s1411_s15] sm:$0xf]  ;;  %vm454_vm1 = vcmask 130048   ;;  %vm515_vm2 = vcmask 261120   ;;  %s422_s12 = scalar_lea.vmem [#allocation12], %s1394_s18  ;;  %s1432_s23 = scalar_lea.hbm %s1483_s7, %s760_s24 }
  0xb2   : > { %790 = vmatpush3.bf16.msra.mxu1 %v873_v8  ;;  %v758_v32 = vld [vmem:[%s1482_s6] ss:$0 sm:$0xff]  ;;  %s582_s26 = sshll.u32 %s422_s12, 4  ;;  %s569_s22 = scalar_lea.sflag [#allocation4], %s1391_s21  ;;  %s1434_s26 = int_to_ptr.vmem [resolvable:$true] %s582_s26 }
  0xb3   : > { %791 = vmatprep.subr.bf16.mxu1 %v1095_v1  ;;  %s1008_s29 = scalar_lea.vmem %s1434_s26, 128  ;;  %p1527_p10 = scmp.ne.s32.totalorder %s1511_s16, 0 }
  0xb4   : > { %p1009_p1 = scmp.ne.s32.totalorder %s1434_s26, %s1008_s29  ;;  %s1097_s18 = smov [#allocation12]  }
  0xb5   : > { %v429_v11 = vstv %s424_s1  ;;  %v437_v12 = vstv %s752_s19  ;;  %s1012_s8 = sshll.u32 %s1097_s18, 4  ;;  %s1013_s8 = int_to_ptr.vmem [resolvable:$false] %s1012_s8 }
  0xb6   : > { %v430_v13 = vmul.f32 %v768_v4, %v429_v11  ;;  %v431_v14 = vmul.f32 %v769_v5, %v429_v11  ;;  %v438_v15 = vmul.f32 %v772_v6, %v437_v12  ;;  %v439_v16 = vmul.f32 %v773_v7, %v437_v12  ;;  %792 = vmatpush3.bf16.msra.mxu1 %v874_v26  ;;  %p1010_p2 = pnand %p1009_p1, %p1527_p10  ;;  %s1014_s30 = scalar_lea.vmem %s1013_s8, 256 }
  0xb7   : > { %v447_v17 = vstv %s753_s2  ;;  %p1015_p12 = scmp.lt.s32.totalorder %s1434_s26, %s1013_s8  ;;  %p1016_p5 = scmp.lt.s32.totalorder %s1014_s30, %s1008_s29 }
  0xb8   : > { %v440_v18 = vadd.f32 %v438_v15, %v430_v13  ;;  %v441_v19 = vadd.f32 %v439_v16, %v431_v14  ;;  %v448_v20 = vmul.f32 %v776_v9, %v447_v17  ;;  %v449_v21 = vmul.f32 %v777_v10, %v447_v17  ;;  %p1011_p4 = pneg %p1010_p2 }
  0xb9   : > { %p1017_p7 = por %p1016_p5, %p1015_p12 }
  0xba   : > { %v450_v22 = vadd.f32 %v448_v20, %v440_v18  ;;  %v451_v23 = vadd.f32 %v449_v21, %v441_v19 }
  0xbb   : > { %p1018_p3 = pnand %p1017_p7, %p1011_p4 }
  0xbc   : > { %v452_v24 = vpack.c.bf16 %v451_v23, %v450_v22 }
  0xbe   : > { %784 = vmatpush3.bf16.msra.mxu0 %v452_v24 }
  0xc1   : > { %786 = vmatmul.mubr.msk.bf16.vlgmr.msra.gmra.mrb[0].mxu0 %vm454_vm1, %v453_v25 }
 0x194   : > { %v492_v27 = vpop.f32.mrb[0].mxu0 }
 0x195   : > { %v498_v28 = vpack.c.bf16 %v492_v27, %v492_v27  ;;  %v787_v29 = vpop.f32.mrb[1].mxu0 }
 0x196   : > { %v495_v30 = vpop.f32.mrb[2].mxu0 }
 0x197   : > { %v788_v31 = vpop.f32.mrb[3].mxu0  ;;  %794 = vmatmul.mubr.msk.bf16.vlgmr.msra.gmra.mrb[0].mxu1 %vm515_vm2, %v498_v28 }
 0x26a   : > { %v553_v33 = vpop.f32.mrb[0].mxu1 }
 0x26b   : > { %v566_v34 = vadd.f32 %v758_v32, %v553_v33  ;;  %v795_v35 = vpop.f32.mrb[1].mxu1 }
 0x26c   : > { %v556_v36 = vpop.f32.mrb[2].mxu1 }
 0x26d   : > { %567 = vst [vmem:[%s422_s12] sm:$0xff] %v566_v34  ;;  %v796_v37 = vpop.f32.mrb[3].mxu1 }
 0x26e   : > { %1021 = shalt.err (!%p1018_p3)
}
 0x26f   : > { %s1022_s21 = scalar_lea.hbm %s1432_s23, 128  ;;  %s1026_s19 = scalar_lea.hbm %s1483_s7, 256 }
 0x270   : > { %p1023_p9 = scmp.ne.s32.totalorder %s1432_s23, %s1022_s21  ;;  %p1027_p0 = scmp.lt.u32.totalorder %s1432_s23, %s1483_s7 }
 0x271   : > { %p1028_p8 = scmp.lt.u32.totalorder %s1026_s19, %s1022_s21  ;;  %p1030_p1 = scmp.lt.u32.totalorder %s1022_s21, %s1432_s23 }
 0x272   : > { %p1024_p13 = pnand %p1023_p9, %p1527_p10 }
 0x273   : > { %p1029_p6 = por %p1028_p8, %p1027_p0 }
 0x274   : > { %p1025_p11 = pneg %p1024_p13 }
 0x275   : > { %p1031_p2 = por %p1030_p1, %p1029_p6 }
 0x277   : > { %p1032_p4 = pnand %p1031_p2, %p1025_p11 }
 0x279   : > { %1035 = shalt.err (!%p1032_p4)
}
 0x27a   : > { %809 = dma.vmem_to_hbm [thread:$0]  (%p1527_p10), %s1434_s26, 128, %s1432_s23, %s569_s22  }
 0x27b PF: > { %s1528_s14 = sld [smem:[#allocation18_spill]]  ;;  %s1529_s17 = sld [smem:[#allocation22_spill]] }
 0x27c   : > { %p1531_p5 = scmp.ge.s32.totalorder %s1086_s27, 2 }
 0x281   : > { %s594_s9 = sand.u32 1, %s1528_s14   ;;  %p1530_p12 = scmp.ne.s32.totalorder %s1529_s17, 0 }
 0x282   : > { %s595_s10 = scalar_lea.sflag [#allocation4], %s594_s9 }
 0x283   : > { %p829_p7 = pnand %p1531_p5, %p1530_p12 }
 0x285   : > { %1069 = dma.done.wait (!%p829_p7), %s595_s10, 128  }
 0x286   : > { %1071 = vsyncadd (!%p829_p7), %s595_s10, 4294967168  ;;  %s1532_s27 = sld [smem:[#allocation20_spill]]  ;;  %s1533_s11 = sld [smem:[#allocation19_spill]] }
 0x287   : > { %s1534_s26 = sld [smem:[#allocation21_spill]]  ;;  %s1535_s24 = smov %s1078_s25 }
 0x28c   : > { %p27_p3 = scmp.ge.s32.totalorder %s1532_s27, 4   ;;  %s1536_s25 = smov %s1533_s11 }
 0x28e   :  { %29 = sbr.rel (!%p27_p3) target bundleno = 13 (0xd), region = 135 }
 0x295   :  { %600 = vsyncpa [#allocation3], 1 }
 0x296   :  { %602 = vsyncpa [#allocation3 + $0x1], 1 }
 0x297   :  { %603 = vsyncpa [#allocation8], 1 }
 0x298   :  { %605 = vsyncpa [#allocation8 + $0x1], 1 }
 0x299   :  { %606 = vsyncpa [#allocation11], 1 }
 0x29a   :  { %608 = vsyncpa [#allocation11 + $0x1], 1 }
 0x29b   :  { %609 = vsyncpa [#allocation4], 1 }
 0x29c   :  { %611 = vsyncpa [#allocation4 + $0x1], 1 }
 0x29d   :  { %612 = vsyncpa [#allocation5], 1 }
 0x29e   :  { %614 = vsyncpa [#allocation5 + $0x1], 1 }

</bundles_post_ra>
